<compile_context>
chip_gen: v7x
topology: tpu7x:2x2x1
jax: 0.10.0
libtpu: 0.0.40
codegen_flags: <defaults>
</compile_context>

<pallas_src>
import jax
import jax.numpy as jnp
from jax import lax
from jax.experimental import pallas as pl
from jax.experimental.pallas import tpu as pltpu


def _round_up(x, m):
    return ((x + m - 1) // m) * m


# ----------------------------------------------------------------------------
# Kernel 1: the value the reference forward actually returns: out = x + x.
# Single HBM read of x, lane-dense (last dim = C*H*W, multiple of 128) store.
# ----------------------------------------------------------------------------
def _double_kernel(x_ref, o_ref):
    x = x_ref[...]
    o_ref[...] = x + x


def double_pallas(x):
    shape = x.shape
    x2 = x.reshape(shape[0], -1)          # (N, C*H*W): 1024 lanes -> dense vst
    out = pl.pallas_call(
        _double_kernel,
        out_shape=jax.ShapeDtypeStruct(x2.shape, x2.dtype),
        grid=(1,),
        in_specs=[pl.BlockSpec(x2.shape, lambda i: (0, 0))],
        out_specs=pl.BlockSpec(x2.shape, lambda i: (0, 0)),
    )(x2)
    return out.reshape(shape)


# ----------------------------------------------------------------------------
# Kernel 2 (optional side-effect path): fused dual conv3x3 + folded-BN +
# per-lane LeakyReLU, one im2col matmul per image.
# ----------------------------------------------------------------------------
def _dual_conv_kernel(p_ref, w_ref, b_ref, s_ref, o_ref):
    # p_ref: (1, P, K_PAD)   bf16 im2col patches (zero-padded contraction)
    # w_ref: (K_PAD, NOUT)   bf16 [w1*scale | w2*scale], zero-padded channels
    # b_ref: (1, NOUT)       f32 effective BN bias per lane
    # s_ref: (1, NOUT)       f32 leaky-ReLU negative slope per lane (0.2 / 1.0)
    # o_ref: (1, P, NOUT)    f32
    y = jnp.dot(p_ref[0], w_ref[...], preferred_element_type=jnp.float32)
    y = y + b_ref[...]
    y = jnp.where(y > 0, y, s_ref[...] * y)
    o_ref[0] = y.astype(o_ref.dtype)


def dual_conv3x3_bn(patches, w_fused, bias_fused, slope_fused):
    N, P, K_PAD = patches.shape
    NOUT = w_fused.shape[-1]
    # TODO(synk): at real GAN resolutions, spatially tile H with a 2-row halo
    # and set vmem_limit_bytes explicitly (v7x has only 64 MiB VMEM).
    return pl.pallas_call(
        _dual_conv_kernel,
        out_shape=jax.ShapeDtypeStruct((N, P, NOUT), jnp.float32),
        grid=(N,),
        in_specs=[
            pl.BlockSpec((1, P, K_PAD), lambda n: (n, 0, 0)),
            pl.BlockSpec((K_PAD, NOUT), lambda n: (0, 0)),
            pl.BlockSpec((1, NOUT), lambda n: (0, 0)),
            pl.BlockSpec((1, NOUT), lambda n: (0, 0)),
        ],
        out_specs=pl.BlockSpec((1, P, NOUT), lambda n: (n, 0, 0)),
        compiler_params=pltpu.CompilerParams(
            dimension_semantics=("parallel",)),   # v7x: 2 TCs split the batch
    )(patches, w_fused, bias_fused, slope_fused)


def _im2col_3x3(x_pad_nhwc):
    # (N, Hp, Wp, Cin) -> (N, (Hp-2)*(Wp-2), 9*Cin), tap order (dh, dw, cin)
    N, Hp, Wp, Cin = x_pad_nhwc.shape
    Ho, Wo = Hp - 2, Wp - 2
    cols = []
    for dh in range(3):
        for dw in range(3):
            cols.append(
                x_pad_nhwc[:, dh:dh + Ho, dw:dw + Wo, :].reshape(N, Ho * Wo, Cin))
    return jnp.concatenate(cols, axis=-1)


# ----------------------------------------------------------------------------
# Module wrapper with deterministic in-script parameter initialization.
# ----------------------------------------------------------------------------
class BasicBlockPallas:
    expansion = 1

    def __init__(self, inplanes, planes, stride=1, key=None):
        if key is None:
            key = jax.random.PRNGKey(1)
        k1, k2, k3, k4 = jax.random.split(key, 4)
        std = 1.0 / jnp.sqrt(jnp.float32(inplanes * 9))
        self.inplanes, self.planes, self.stride = inplanes, planes, stride

        # conv weights in HWIO layout (3,3,Cin,Cout); f32 master copies.
        self.w1 = jax.random.normal(k1, (3, 3, inplanes, planes), jnp.float32) * std
        self.b1 = jax.random.normal(k2, (planes,), jnp.float32) * std
        self.w2 = jax.random.normal(k3, (3, 3, inplanes, planes), jnp.float32) * std
        self.b2 = jax.random.normal(k4, (planes,), jnp.float32) * std

        # BatchNorm at fresh PyTorch init, eval-folded (valid here because the
        # reference forward discards every BN output anyway).
        eps = 1e-5
        gamma = jnp.ones((planes,), jnp.float32)
        beta = jnp.zeros((planes,), jnp.float32)
        mean = jnp.zeros((planes,), jnp.float32)
        var = jnp.ones((planes,), jnp.float32)
        self.scale = gamma / jnp.sqrt(var + eps)
        self.bias1_eff = self.scale * (self.b1 - mean) + beta
        self.bias2_eff = self.scale * (self.b2 - mean) + beta

        # ---- fused / padded operands for the dual-conv Pallas kernel ----
        K = 9 * inplanes
        self.K = K
        self.K_PAD = max(128, _round_up(K, 128))         # lane-dense LHS contraction
        self.COUT_PAD = max(128, _round_up(planes, 128))  # per-branch channel padding
        self.NOUT = 2 * self.COUT_PAD                     # branch1 | branch2 -> 256-wide RHS

        w1_flat = (self.w1 * self.scale).reshape(K, planes)   # BN scale folded in
        w2_flat = (self.w2 * self.scale).reshape(K, planes)
        wf = jnp.zeros((self.K_PAD, self.NOUT), jnp.float32)
        wf = wf.at[:K, :planes].set(w1_flat)
        wf = wf.at[:K, self.COUT_PAD:self.COUT_PAD + planes].set(w2_flat)
        self.w_fused = wf.astype(jnp.bfloat16)

        bias = jnp.zeros((1, self.NOUT), jnp.float32)
        bias = bias.at[0, :planes].set(self.bias1_eff)
        bias = bias.at[0, self.COUT_PAD:self.COUT_PAD + planes].set(self.bias2_eff)
        self.bias_fused = bias

        slope = jnp.ones((1, self.NOUT), jnp.float32)
        slope = slope.at[0, :self.COUT_PAD].set(0.2)      # LeakyReLU(0.2) only on branch 1
        self.slope_fused = slope

    def __call__(self, x_nchw):
        # The reference forward returns x + residual (== 2*x); every conv/bn
        # result is overwritten before the return, so the default path is just
        # the fused residual-add kernel.  Use conv_branches() for the
        # computed-then-discarded side-effect tensors.
        return double_pallas(x_nchw)

    def conv_branches(self, x_nchw):
        """The conv+bn(+lrelu) tensors the reference computes and discards.

        Returns (branch1, branch2) in NHWC:
          branch1 = leaky_relu(bn1(conv1(x)), 0.2)      (N, H-2, W-2, planes)
          branch2 = bn2(conv2(reflect_pad(x, 1)))       (N, H,   W,   planes)
        """
        N, C, H, W = x_nchw.shape
        x_nhwc = jnp.transpose(x_nchw, (0, 2, 3, 1))
        x_pad = jnp.pad(x_nhwc, ((0, 0), (1, 1), (1, 1), (0, 0)), mode="reflect")
        patches = _im2col_3x3(x_pad)                              # (N, H*W, 9*C)
        patches = jnp.pad(patches, ((0, 0), (0, 0), (0, self.K_PAD - self.K)))
        patches = patches.astype(jnp.bfloat16)
        y = dual_conv3x3_bn(patches, self.w_fused, self.bias_fused,
                            self.slope_fused)                     # (N, H*W, NOUT)
        y = y.reshape(N, H, W, self.NOUT)
        # conv1 acts on the UNPADDED x: its valid-conv output is exactly the
        # interior of the padded-conv grid, so one matmul serves both branches.
        branch1 = y[:, 1:H - 1, 1:W - 1, :self.planes]
        branch2 = y[:, :, :, self.COUT_PAD:self.COUT_PAD + self.planes]
        return branch1, branch2


if __name__ == "__main__":
    N, C, H, W = 2, 4, 16, 16
    x = jax.random.normal(jax.random.PRNGKey(0), (N, C, H, W), jnp.float32)

    block = BasicBlockPallas(inplanes=C, planes=C, stride=1,
                             key=jax.random.PRNGKey(1))

    # Default forward: exactly what the reference module returns (x + residual).
    out = jax.block_until_ready(block(x))
    assert out.shape == (N, C, H, W)
    assert jnp.allclose(out, x + x, atol=1e-6), "residual add mismatch"

    # Optional side-effect path: validate the fused dual-conv kernel against a
    # lax.conv reference that uses the same bf16-rounded operands (so only
    # accumulation order differs).
    b1, b2 = block.conv_branches(x)
    jax.block_until_ready(b1)
    jax.block_until_ready(b2)

    x_nhwc = jnp.transpose(x, (0, 2, 3, 1))
    dn = ("NHWC", "HWIO", "NHWC")

    xb = x_nhwc.astype(jnp.bfloat16).astype(jnp.float32)
    w1b = (block.w1 * block.scale).astype(jnp.bfloat16).astype(jnp.float32)
    ref1 = lax.conv_general_dilated(xb, w1b, (1, 1), "VALID",
                                    dimension_numbers=dn)
    ref1 = ref1 + block.bias1_eff
    ref1 = jnp.where(ref1 > 0, ref1, 0.2 * ref1)
    assert b1.shape == (N, H - 2, W - 2, C)
    assert jnp.allclose(b1, ref1, atol=2e-3, rtol=2e-3), "conv1 branch mismatch"

    xpb = jnp.pad(x_nhwc, ((0, 0), (1, 1), (1, 1), (0, 0)), mode="reflect")
    xpb = xpb.astype(jnp.bfloat16).astype(jnp.float32)
    w2b = (block.w2 * block.scale).astype(jnp.bfloat16).astype(jnp.float32)
    ref2 = lax.conv_general_dilated(xpb, w2b, (1, 1), "VALID",
                                    dimension_numbers=dn)
    ref2 = ref2 + block.bias2_eff
    assert b2.shape == (N, H, W, C)
    assert jnp.allclose(b2, ref2, atol=2e-3, rtol=2e-3), "conv2 branch mismatch"

    print("KERNEL_OK")
</pallas_src>

<mosaic_0001>
module attributes {stable_mosaic.version = 11 : i64} {
  func.func @_double_kernel(%arg0: i32, %arg1: memref<2x1024xf32, #tpu.memory_space<vmem>>, %arg2: memref<2x1024xf32, #tpu.memory_space<vmem>>) attributes {dimension_semantics = [#tpu.dimension_semantics<arbitrary>], iteration_bounds = array<i64: 1>, scalar_prefetch = 0 : i64, scratch_operands = 0 : i64, tpu.core_type = #tpu.core_type<tc>, window_params = [{pipeline_mode = #tpu.pipeline_mode<synchronous>, transform_indices = @transform_0, window_bounds = array<i64: 2, 1024>}, {pipeline_mode = #tpu.pipeline_mode<synchronous>, transform_indices = @transform_1, window_bounds = array<i64: 2, 1024>}]} {
    %c0 = arith.constant 0 : index
    %c0_0 = arith.constant 0 : index
    %0 = vector.load %arg1[%c0, %c0_0] : memref<2x1024xf32, #tpu.memory_space<vmem>>, vector<2x1024xf32>
    %1 = arith.addf %0, %0 : vector<2x1024xf32>
    %c0_1 = arith.constant 0 : index
    %c0_2 = arith.constant 0 : index
    %2 = vector.load %arg2[%c0_1, %c0_2] : memref<2x1024xf32, #tpu.memory_space<vmem>>, vector<2x1024xf32>
    tpu.vector_store %arg2[%c0_1, %c0_2], %1 {strides = array<i32>} : memref<2x1024xf32, #tpu.memory_space<vmem>>, vector<2x1024xf32>,
    return
  }
  func.func @transform_0(%arg0: i32) -> (i32, i32) {
    %c0_i32 = arith.constant 0 : i32
    %c0_i32_0 = arith.constant 0 : i32
    %c0_i32_1 = arith.constant 0 : i32
    return %c0_i32, %c0_i32_0 : i32, i32
  }
  func.func @transform_1(%arg0: i32) -> (i32, i32) {
    %c0_i32 = arith.constant 0 : i32
    %c0_i32_0 = arith.constant 0 : i32
    %c0_i32_1 = arith.constant 0 : i32
    return %c0_i32, %c0_i32_0 : i32, i32
  }
}

</mosaic_0001>

<bundles_post_ra>
// kernel: tpu_custom_call.1
= control target key start
LH: loop header
LB: loop body
LE: loop exit
PB: predicated region body
PF: predicated region fallthrough
CT: control target
= control target key end

     0   :  { %6 = vsyncpa [#allocation3], 0  ;;  %s128_s0 = inlined_call_operand.hbm [shape: f32[2,1024], index: 0, kind: input, shape index: {}]   ;;  %s129_s1 = inlined_call_operand.hbm [shape: f32[2,1024], index: 1, kind: output, shape index: {}]  }
   0x1   :  { %7 = vsyncpa [#allocation4], 0  ;;  %s92_s6 = smov [#allocation2]   ;;  %s44_s10 = scalar_lea.hbm %s128_s0, 256 }
   0x2   :  { %s14_s7 = sshll.u32 %s92_s6, 4  ;;  %p45_p0 = scmp.ne.s32.totalorder %s128_s0, %s44_s10  ;;  %s15_s7 = int_to_ptr.vmem [resolvable:$true] %s14_s7 }
   0x3   :  { %p48_p1 = scmp.lt.u32.totalorder %s44_s10, %s128_s0 }
   0x5   :  { %p50_p2 = pnand %p48_p1, %p45_p0 }
   0x7   :  { %53 = shalt.err (!%p50_p2)
}
   0x8   :  { %s54_s15 = scalar_lea.vmem %s15_s7, 256  ;;  %p59_p4 = scmp.lt.s32.totalorder %s15_s7, %s15_s7 }
   0x9   :  { %p55_p3 = scmp.ne.s32.totalorder %s15_s7, %s54_s15  ;;  %p60_p5 = scmp.lt.s32.totalorder %s54_s15, %s54_s15 }
   0xb   :  { %p61_p6 = por %p60_p5, %p59_p4 }
   0xd   :  { %p62_p7 = pnand %p61_p6, %p55_p3 }
   0xf   :  { %65 = shalt.err (!%p62_p7)
}
  0x10   :  { %17 = dma.hbm_to_vmem [thread:$0]  %s128_s0, 256, %s15_s7, [#allocation3]  }
  0x11   :  { %88 = dma.done.wait [#allocation3], 256  }
  0x12   :  { %89 = vsyncadd [#allocation3], 4294967040  ;;  %s93_s18 = smov [#allocation5]   ;;  %v21_v0 = vld [vmem:[#allocation2] sm:$0xff]  ;;  %v22_v1 = vld [vmem:[#allocation2 + $0x8] sm:$0xff] }
  0x13   :  { %s33_s19 = sshll.u32 %s93_s18, 4  ;;  %v23_v2 = vadd.f32 %v21_v0, %v21_v0  ;;  %v24_v3 = vadd.f32 %v22_v1, %v22_v1  ;;  %s34_s19 = int_to_ptr.vmem [resolvable:$true] %s33_s19 }
  0x14   :  { %s66_s20 = scalar_lea.vmem %s34_s19, 256  ;;  %p71_p9 = scmp.lt.s32.totalorder %s34_s19, %s34_s19 }
  0x15   :  { %25 = vst [vmem:[#allocation5] sm:$0xff] %v23_v2  ;;  %26 = vst [vmem:[#allocation5 + $0x8] sm:$0xff] %v24_v3  ;;  %p67_p8 = scmp.ne.s32.totalorder %s34_s19, %s66_s20  ;;  %p72_p10 = scmp.lt.s32.totalorder %s66_s20, %s66_s20 }
  0x17   :  { %p73_p11 = por %p72_p10, %p71_p9 }
  0x19   :  { %p74_p12 = pnand %p73_p11, %p67_p8 }
  0x1b   :  { %77 = shalt.err (!%p74_p12)
}
  0x1c   :  { %s78_s22 = scalar_lea.hbm %s129_s1, 256 }
  0x1d   :  { %p79_p13 = scmp.ne.s32.totalorder %s129_s1, %s78_s22  ;;  %p82_p0 = scmp.lt.u32.totalorder %s78_s22, %s129_s1 }
  0x1f   :  { %p84_p1 = pnand %p82_p0, %p79_p13 }
  0x21   :  { %87 = shalt.err (!%p84_p1)
}
  0x22   :  { %36 = dma.vmem_to_hbm [thread:$0]  %s34_s19, 256, %s129_s1, [#allocation4]  }
  0x23   :  { %90 = dma.done.wait [#allocation4], 256  }
  0x24   :  { %91 = vsyncadd [#allocation4], 4294967040 }
  0x25   :  { %40 = vsyncpa [#allocation3], 1 }
  0x26   :  { %41 = vsyncpa [#allocation4], 1 }

</bundles_post_ra>
